<compile_context>
chip_gen: v7x
topology: tpu7x:2x2x1
jax: 0.10.0
libtpu: 0.0.40
codegen_flags: <defaults>
</compile_context>

<pallas_src>
import jax
import jax.numpy as jnp
from jax.experimental import pallas as pl
from jax.experimental.pallas import tpu as pltpu

_SMALL_COPY_BYTES = 1 << 20     # below this, plain XLA copy beats any kernel launch
_CHUNK_TARGET_BYTES = 4 << 20   # aim for ~4 MiB per outstanding DMA descriptor
_MAX_CHUNKS = 8


def latentz_forward(z: jax.Array) -> jax.Array:
    """Exact equivalent of LatentZ.forward(): return the stored parameter.

    The dominant optimization for an identity op is to not move data at all.
    WARNING: the result aliases the parameter array (same buffer).
    """
    return z


def _copy_kernel_single(z_hbm, o_hbm, sem):
    # One HBM -> HBM DMA; bytes never route through vregs or VMEM tiles.
    cp = pltpu.make_async_copy(z_hbm, o_hbm, sem)
    cp.start()
    cp.wait()


def _make_copy_kernel_chunked(chunks):
    # `chunks` is a static Python list of (offset, size) along the leading axis.
    def kernel(z_hbm, o_hbm, sems):
        cps = []
        for i, (off, sz) in enumerate(chunks):
            cp = pltpu.make_async_copy(
                z_hbm.at[pl.ds(off, sz)],
                o_hbm.at[pl.ds(off, sz)],
                sems.at[i],
            )
            cp.start()              # issue all descriptors first ...
            cps.append(cp)
        for cp in cps:              # ... then drain them all
            cp.wait()
    return kernel


def _materialize_pallas(z: jax.Array, n_chunks: int | None = None) -> jax.Array:
    """Pallas HBM->HBM DMA copy of z into a fresh buffer (bitwise exact)."""
    nbytes = z.size * z.dtype.itemsize
    if n_chunks is None:
        n_chunks = max(1, min(_MAX_CHUNKS, nbytes // _CHUNK_TARGET_BYTES))
    if z.ndim == 0:
        n_chunks = 1
    else:
        n_chunks = max(1, min(int(n_chunks), z.shape[0]))

    if n_chunks == 1:
        kernel = _copy_kernel_single
        scratch = [pltpu.SemaphoreType.DMA(())]
    else:
        lead = z.shape[0]
        base, rem = divmod(lead, n_chunks)
        chunks, off = [], 0
        for i in range(n_chunks):
            sz = base + (1 if i < rem else 0)
            chunks.append((off, sz))
            off += sz
        kernel = _make_copy_kernel_chunked(chunks)
        scratch = [pltpu.SemaphoreType.DMA((n_chunks,))]

    return pl.pallas_call(
        kernel,
        out_shape=jax.ShapeDtypeStruct(z.shape, z.dtype),
        in_specs=[pl.BlockSpec(memory_space=pl.ANY)],   # raw HBM ref, no auto-DMA
        out_specs=pl.BlockSpec(memory_space=pl.ANY),    # raw HBM ref, no auto-DMA
        scratch_shapes=scratch,
    )(z)


def latentz_materialize(z: jax.Array, *, force_pallas: bool = False) -> jax.Array:
    """Fresh buffer holding z.

    Small latents: plain XLA copy (no pallas_call dispatch overhead, no fusion
    barrier). Large latents: chunked Pallas HBM->HBM DMA at HBM roofline.
    """
    nbytes = z.size * z.dtype.itemsize
    if not force_pallas and nbytes < _SMALL_COPY_BYTES:
        return jnp.copy(z)
    return _materialize_pallas(z)


# TODO(synk): torch.nn.Parameter registration / reinit() are host-side state
# management with no kernel equivalent; the "parameter" here is just a jax.Array.


if __name__ == "__main__":
    # Deterministic stand-in for init_val.data.
    key = jax.random.PRNGKey(0)
    k0, k1 = jax.random.split(key)
    batch, latent_dim = 2, 64
    z_param = jax.random.normal(k0, (batch, latent_dim), dtype=jnp.float32)

    # forward(): identity — no kernel, no HBM traffic, no launch overhead.
    out_fast = jax.block_until_ready(latentz_forward(z_param))

    # Size-gated materialize: this size takes the plain-XLA copy path.
    out_copy = jax.block_until_ready(latentz_materialize(z_param))

    # Exercise the Pallas single-DMA path once on TPU (forced past the size gate).
    out_pallas = jax.block_until_ready(latentz_materialize(z_param, force_pallas=True))

    # Exercise the chunked multi-DMA path once (small shape, forced 4 chunks).
    z_big = jax.random.normal(k1, (16, 128), dtype=jnp.float32)
    out_chunked = jax.block_until_ready(_materialize_pallas(z_big, n_chunks=4))

    # forward() must return exactly the stored parameter (bitwise identical).
    assert out_fast.shape == z_param.shape and out_fast.dtype == z_param.dtype
    assert out_copy.shape == z_param.shape and out_copy.dtype == z_param.dtype
    assert out_pallas.shape == z_param.shape and out_pallas.dtype == z_param.dtype
    assert bool(jnp.array_equal(out_fast, z_param))
    assert bool(jnp.array_equal(out_copy, z_param))
    assert bool(jnp.array_equal(out_pallas, z_param))
    assert bool(jnp.array_equal(out_chunked, z_big))

    print("KERNEL_OK")
</pallas_src>

<mosaic_0001>
module attributes {stable_mosaic.version = 11 : i64} {
  func.func @_copy_kernel_single(%arg0: memref<2x64xf32, #tpu.memory_space<any>>, %arg1: memref<2x64xf32, #tpu.memory_space<any>>, %arg2: memref<!tpu.dma_semaphore, #tpu.memory_space<semaphore_mem>>) attributes {dimension_semantics = [], scalar_prefetch = 0 : i64, scratch_operands = 1 : i64, tpu.core_type = #tpu.core_type<tc>} {
    tpu.enqueue_dma source(%arg0 : memref<2x64xf32, #tpu.memory_space<any>>) target(%arg1 : memref<2x64xf32, #tpu.memory_space<any>>) target_semaphore(%arg2 : memref<!tpu.dma_semaphore, #tpu.memory_space<semaphore_mem>>)
    tpu.wait_dma2 semaphore(%arg2 : memref<!tpu.dma_semaphore, #tpu.memory_space<semaphore_mem>>) src(%arg0 : memref<2x64xf32, #tpu.memory_space<any>>) dst(%arg1 : memref<2x64xf32, #tpu.memory_space<any>>)
    return
  }
}

</mosaic_0001>

<bundles_post_ra>
// kernel: tpu_custom_call.1
= control target key start
LH: loop header
LB: loop body
LE: loop exit
PB: predicated region body
PF: predicated region fallthrough
CT: control target
= control target key end

     0   :  { %s34_s6 = smov [#allocation2]   ;;  %s35_s7 = smov [#allocation3]   ;;  %s53_s0 = inlined_call_operand.hbm [shape: f32[2,64], index: 0, kind: input, shape index: {}]   ;;  %s54_s1 = inlined_call_operand.hbm [shape: f32[2,64], index: 1, kind: output, shape index: {}]  }
   0x1   :  { %s36_s8 = smov 0  }
   0x2   :  { %18 = dma.general %s53_s0, 32, %s54_s1, %s34_s6, %s35_s7, [#allocation4], %s36_s8, 0  }
   0x3   :  { %32 = dma.done.wait [#allocation2], 32 }
   0x4   :  { %33 = vsyncadd [#allocation2], 4294967264 }
   0x5   :  { %22 = vsyncmov [#allocation2] }
   0x8   :  { %s23_s13 = vpop.sfrf %22 }
   0x9   :  { %p28_p0 = scmp.ne.s32.totalorder %s23_s13, 0 }
   0xb   :  { %27 = shalt.err (%p28_p0)  }

</bundles_post_ra>
